<compile_context>
chip_gen: v6e
topology: v6e:2x2x1
jax: 0.10.0
libtpu: 0.0.40
codegen_flags: <defaults>
</compile_context>

<pallas_src>
import jax
import jax.numpy as jnp
from jax.experimental import pallas as pl
from jax.experimental.pallas import tpu as pltpu

LANES = 128
MAX_TILE_ROWS = 1024   # 512 KiB f32 per input tile; safe for v5e/v6e/v7x VMEM
NUM_SPLITS = 2         # leading "parallel" grid axis (v7x megacore); harmless on 1-TC chips


def _cdiv(a, b):
    return -(-a // b)


def _round_up(a, b):
    return _cdiv(a, b) * b


def _dice_bce_kernel(x_ref, t_ref, pt_out, inter_out, bce_out,
                     acc_pt, acc_inter, acc_bce):
    i = pl.program_id(1)

    @pl.when(i == 0)
    def _():
        acc_pt[...] = jnp.zeros_like(acc_pt)
        acc_inter[...] = jnp.zeros_like(acc_inter)
        acc_bce[...] = jnp.zeros_like(acc_bce)

    x = x_ref[...].astype(jnp.float32)
    t = t_ref[...].astype(jnp.float32)

    # Numerically stable logit-space BCE (1 exp + 1 log1p + 1 recip per elem):
    #   -log(sigmoid(x))     = max(-x, 0) + log1p(exp(-|x|))
    #   -log(1 - sigmoid(x)) = max( x, 0) + log1p(exp(-|x|))
    # torch.binary_cross_entropy clamps each log term at -100 -> min(., 100).
    e = jnp.exp(-jnp.abs(x))
    l1p = jnp.log1p(e)
    r = 1.0 / (1.0 + e)
    p = jnp.where(x >= 0, r, e * r)                       # sigmoid(x) in f32
    neg_log_p = jnp.minimum(jnp.maximum(-x, 0.0) + l1p, 100.0)
    neg_log_1mp = jnp.minimum(jnp.maximum(x, 0.0) + l1p, 100.0)
    bce = t * neg_log_p + (1.0 - t) * neg_log_1mp

    def fold(v):
        # (tile_rows, 128) -> (8, 128): vreg-aligned regrouping + VPU adds only.
        return jnp.sum(v.reshape(-1, 8, LANES), axis=0)

    acc_pt[...] += fold(p + t)       # sum(p) + sum(t)
    acc_inter[...] += fold(p * t)    # sum(p * t)
    acc_bce[...] += fold(bce)        # sum of elementwise BCE

    @pl.when(i == pl.num_programs(1) - 1)
    def _():
        pt_out[0] = acc_pt[...]
        inter_out[0] = acc_inter[...]
        bce_out[0] = acc_bce[...]


def dice_bce_loss(inputs, targets, smooth=1.0):
    """inputs, targets: matching arbitrary shapes (e.g. NCHW logits / labels)."""
    n = inputs.size
    assert targets.size == n

    x = inputs.reshape(-1)
    t = targets.reshape(-1)

    rows = _cdiv(n, LANES)
    tile_rows = min(MAX_TILE_ROWS, _round_up(_cdiv(rows, NUM_SPLITS), 8))
    steps = _cdiv(rows, NUM_SPLITS * tile_rows)
    padded_rows = NUM_SPLITS * steps * tile_rows
    padded_n = padded_rows * LANES

    pad = padded_n - n
    if pad:
        # x = -1e30  =>  p = 0, bce = 0 ; with t = 0 every partial sum gets +0.
        x = jnp.pad(x, (0, pad), constant_values=-1e30)
        t = jnp.pad(t, (0, pad), constant_values=0)

    x2d = x.reshape(padded_rows, LANES)
    t2d = t.reshape(padded_rows, LANES)

    in_map = lambda c, i: (c * steps + i, 0)
    out_map = lambda c, i: (c, 0, 0)
    part_shape = jax.ShapeDtypeStruct((NUM_SPLITS, 8, LANES), jnp.float32)

    pt_part, inter_part, bce_part = pl.pallas_call(
        _dice_bce_kernel,
        out_shape=(part_shape, part_shape, part_shape),
        grid=(NUM_SPLITS, steps),
        in_specs=[
            pl.BlockSpec((tile_rows, LANES), in_map),
            pl.BlockSpec((tile_rows, LANES), in_map),
        ],
        out_specs=(
            pl.BlockSpec((1, 8, LANES), out_map),
            pl.BlockSpec((1, 8, LANES), out_map),
            pl.BlockSpec((1, 8, LANES), out_map),
        ),
        scratch_shapes=[
            pltpu.VMEM((8, LANES), jnp.float32),
            pltpu.VMEM((8, LANES), jnp.float32),
            pltpu.VMEM((8, LANES), jnp.float32),
        ],
        compiler_params=pltpu.CompilerParams(
            dimension_semantics=("parallel", "arbitrary")),
    )(x2d, t2d)

    # Tiny final combine in plain JAX (3 reductions over 2*8*128 f32 values).
    sum_pt = jnp.sum(pt_part)          # sum(p) + sum(t)
    inter = jnp.sum(inter_part)        # sum(p * t)
    bce_sum = jnp.sum(bce_part)

    smooth = jnp.float32(smooth)
    dice_loss = 1.0 - (2.0 * inter + smooth) / (sum_pt + smooth)
    bce_mean = bce_sum / jnp.float32(n)
    return bce_mean + dice_loss


def _reference(inputs, targets, smooth=1.0):
    """Pure-JAX reference with torch BCELoss semantics (log clamped at -100)."""
    p = jax.nn.sigmoid(inputs.astype(jnp.float32)).reshape(-1)
    t = targets.astype(jnp.float32).reshape(-1)
    inter = jnp.sum(p * t)
    dice = 1.0 - (2.0 * inter + smooth) / (jnp.sum(p) + jnp.sum(t) + smooth)
    bce = jnp.mean(-(t * jnp.maximum(jnp.log(p), -100.0)
                     + (1.0 - t) * jnp.maximum(jnp.log(1.0 - p), -100.0)))
    return bce + dice


if __name__ == "__main__":
    key = jax.random.PRNGKey(0)
    k1, k2, k3, k4 = jax.random.split(key, 4)

    # NCHW-like shapes: batch=2, channels=4, spatial=16x16  -> 2048 elements
    shape = (2, 4, 16, 16)
    logits = jax.random.normal(k1, shape, dtype=jnp.float32)
    labels = (jax.random.uniform(k2, shape) > 0.5).astype(jnp.float32)

    loss = dice_bce_loss(logits, labels, smooth=1.0)
    jax.block_until_ready(loss)
    ref = _reference(logits, labels, smooth=1.0)
    assert jnp.allclose(loss, ref, atol=2e-5, rtol=2e-5), (loss, ref)

    # Non-aligned size to exercise the padding path (pads contribute exactly 0).
    shape2 = (2, 3, 17, 19)
    logits2 = jax.random.normal(k3, shape2, dtype=jnp.float32)
    labels2 = (jax.random.uniform(k4, shape2) > 0.5).astype(jnp.float32)
    loss2 = dice_bce_loss(logits2, labels2, smooth=1.0)
    jax.block_until_ready(loss2)
    ref2 = _reference(logits2, labels2, smooth=1.0)
    assert jnp.allclose(loss2, ref2, atol=2e-5, rtol=2e-5), (loss2, ref2)

    print("KERNEL_OK")
</pallas_src>

<mosaic_0001>
module attributes {stable_mosaic.version = 11 : i64} {
  func.func @_dice_bce_kernel(%arg0: i32, %arg1: i32, %arg2: memref<8x128xf32, #tpu.memory_space<vmem>>, %arg3: memref<8x128xf32, #tpu.memory_space<vmem>>, %arg4: memref<1x8x128xf32, #tpu.memory_space<vmem>>, %arg5: memref<1x8x128xf32, #tpu.memory_space<vmem>>, %arg6: memref<1x8x128xf32, #tpu.memory_space<vmem>>, %arg7: memref<8x128xf32, #tpu.memory_space<vmem>>, %arg8: memref<8x128xf32, #tpu.memory_space<vmem>>, %arg9: memref<8x128xf32, #tpu.memory_space<vmem>>) attributes {dimension_semantics = [#tpu.dimension_semantics<parallel>, #tpu.dimension_semantics<arbitrary>], iteration_bounds = array<i64: 2, 1>, scalar_prefetch = 0 : i64, scratch_operands = 3 : i64, tpu.core_type = #tpu.core_type<tc>, window_params = [{transform_indices = @transform_0, window_bounds = array<i64: 8, 128>}, {transform_indices = @transform_1, window_bounds = array<i64: 8, 128>}, {transform_indices = @transform_2, window_bounds = array<i64: 1, 8, 128>}, {transform_indices = @transform_3, window_bounds = array<i64: 1, 8, 128>}, {transform_indices = @transform_4, window_bounds = array<i64: 1, 8, 128>}]} {
    %c0_i32 = arith.constant 0 : i32
    %0 = arith.cmpi eq, %arg1, %c0_i32 : i32
    %1 = arith.extui %0 : i1 to i32
    %c0_i32_0 = arith.constant 0 : i32
    %2 = arith.cmpi ne, %1, %c0_i32_0 : i32
    scf.if %2 {
      %cst_30 = arith.constant 0.000000e+00 : f32
      %55 = vector.broadcast %cst_30 : f32 to vector<8x128xf32>
      %c0_31 = arith.constant 0 : index
      %c0_32 = arith.constant 0 : index
      %56 = vector.load %arg7[%c0_31, %c0_32] : memref<8x128xf32, #tpu.memory_space<vmem>>, vector<8x128xf32>
      tpu.vector_store %arg7[%c0_31, %c0_32], %55 {strides = array<i32>} : memref<8x128xf32, #tpu.memory_space<vmem>>, vector<8x128xf32>,
      %cst_33 = arith.constant 0.000000e+00 : f32
      %57 = vector.broadcast %cst_33 : f32 to vector<8x128xf32>
      %c0_34 = arith.constant 0 : index
      %c0_35 = arith.constant 0 : index
      %58 = vector.load %arg8[%c0_34, %c0_35] : memref<8x128xf32, #tpu.memory_space<vmem>>, vector<8x128xf32>
      tpu.vector_store %arg8[%c0_34, %c0_35], %57 {strides = array<i32>} : memref<8x128xf32, #tpu.memory_space<vmem>>, vector<8x128xf32>,
      %cst_36 = arith.constant 0.000000e+00 : f32
      %59 = vector.broadcast %cst_36 : f32 to vector<8x128xf32>
      %c0_37 = arith.constant 0 : index
      %c0_38 = arith.constant 0 : index
      %60 = vector.load %arg9[%c0_37, %c0_38] : memref<8x128xf32, #tpu.memory_space<vmem>>, vector<8x128xf32>
      tpu.vector_store %arg9[%c0_37, %c0_38], %59 {strides = array<i32>} : memref<8x128xf32, #tpu.memory_space<vmem>>, vector<8x128xf32>,
    } else {
    }
    %c0 = arith.constant 0 : index
    %c0_1 = arith.constant 0 : index
    %3 = vector.load %arg2[%c0, %c0_1] : memref<8x128xf32, #tpu.memory_space<vmem>>, vector<8x128xf32>
    %c0_2 = arith.constant 0 : index
    %c0_3 = arith.constant 0 : index
    %4 = vector.load %arg3[%c0_2, %c0_3] : memref<8x128xf32, #tpu.memory_space<vmem>>, vector<8x128xf32>
    %5 = math.absf %3 : vector<8x128xf32>
    %cst = arith.constant 0.000000e+00 : f32
    %6 = vector.broadcast %cst : f32 to vector<8x128xf32>
    %7 = arith.subf %6, %5 : vector<8x128xf32>
    %8 = math.exp %7 : vector<8x128xf32>
    %9 = math.log1p %8 : vector<8x128xf32>
    %cst_4 = arith.constant 1.000000e+00 : f32
    %10 = vector.broadcast %cst_4 : f32 to vector<8x128xf32>
    %11 = arith.addf %10, %8 : vector<8x128xf32>
    %cst_5 = arith.constant 1.000000e+00 : f32
    %12 = vector.broadcast %cst_5 : f32 to vector<8x128xf32>
    %13 = arith.divf %12, %11 : vector<8x128xf32>
    %cst_6 = arith.constant 0.000000e+00 : f32
    %14 = vector.broadcast %cst_6 : f32 to vector<8x128xf32>
    %15 = arith.cmpf oge, %3, %14 : vector<8x128xf32>
    %16 = arith.mulf %8, %13 : vector<8x128xf32>
    %17 = arith.select %15, %13, %16 : vector<8x128xi1>, vector<8x128xf32>
    %cst_7 = arith.constant 0.000000e+00 : f32
    %18 = vector.broadcast %cst_7 : f32 to vector<8x128xf32>
    %19 = arith.subf %18, %3 : vector<8x128xf32>
    %cst_8 = arith.constant 0.000000e+00 : f32
    %20 = vector.broadcast %cst_8 : f32 to vector<8x128xf32>
    %21 = arith.maximumf %19, %20 : vector<8x128xf32>
    %22 = arith.addf %21, %9 : vector<8x128xf32>
    %cst_9 = arith.constant 1.000000e+02 : f32
    %23 = vector.broadcast %cst_9 : f32 to vector<8x128xf32>
    %24 = arith.minimumf %22, %23 : vector<8x128xf32>
    %cst_10 = arith.constant 0.000000e+00 : f32
    %25 = vector.broadcast %cst_10 : f32 to vector<8x128xf32>
    %26 = arith.maximumf %3, %25 : vector<8x128xf32>
    %27 = arith.addf %26, %9 : vector<8x128xf32>
    %cst_11 = arith.constant 1.000000e+02 : f32
    %28 = vector.broadcast %cst_11 : f32 to vector<8x128xf32>
    %29 = arith.minimumf %27, %28 : vector<8x128xf32>
    %30 = arith.mulf %4, %24 : vector<8x128xf32>
    %cst_12 = arith.constant 1.000000e+00 : f32
    %31 = vector.broadcast %cst_12 : f32 to vector<8x128xf32>
    %32 = arith.subf %31, %4 : vector<8x128xf32>
    %33 = arith.mulf %32, %29 : vector<8x128xf32>
    %34 = arith.addf %30, %33 : vector<8x128xf32>
    %c0_13 = arith.constant 0 : index
    %c0_14 = arith.constant 0 : index
    %35 = vector.load %arg7[%c0_13, %c0_14] : memref<8x128xf32, #tpu.memory_space<vmem>>, vector<8x128xf32>
    %36 = arith.addf %17, %4 : vector<8x128xf32>
    %37 = vector.shape_cast %36 : vector<8x128xf32> to vector<1x8x128xf32>
    %cst_15 = arith.constant dense<0.000000e+00> : vector<8x128xf32>
    %38 = vector.multi_reduction <add>, %37, %cst_15 [0] : vector<1x8x128xf32> to vector<8x128xf32>
    %39 = arith.addf %35, %38 : vector<8x128xf32>
    %c0_16 = arith.constant 0 : index
    %c0_17 = arith.constant 0 : index
    %40 = vector.load %arg7[%c0_16, %c0_17] : memref<8x128xf32, #tpu.memory_space<vmem>>, vector<8x128xf32>
    tpu.vector_store %arg7[%c0_16, %c0_17], %39 {strides = array<i32>} : memref<8x128xf32, #tpu.memory_space<vmem>>, vector<8x128xf32>,
    %c0_18 = arith.constant 0 : index
    %c0_19 = arith.constant 0 : index
    %41 = vector.load %arg8[%c0_18, %c0_19] : memref<8x128xf32, #tpu.memory_space<vmem>>, vector<8x128xf32>
    %42 = arith.mulf %17, %4 : vector<8x128xf32>
    %43 = vector.shape_cast %42 : vector<8x128xf32> to vector<1x8x128xf32>
    %cst_20 = arith.constant dense<0.000000e+00> : vector<8x128xf32>
    %44 = vector.multi_reduction <add>, %43, %cst_20 [0] : vector<1x8x128xf32> to vector<8x128xf32>
    %45 = arith.addf %41, %44 : vector<8x128xf32>
    %c0_21 = arith.constant 0 : index
    %c0_22 = arith.constant 0 : index
    %46 = vector.load %arg8[%c0_21, %c0_22] : memref<8x128xf32, #tpu.memory_space<vmem>>, vector<8x128xf32>
    tpu.vector_store %arg8[%c0_21, %c0_22], %45 {strides = array<i32>} : memref<8x128xf32, #tpu.memory_space<vmem>>, vector<8x128xf32>,
    %c0_23 = arith.constant 0 : index
    %c0_24 = arith.constant 0 : index
    %47 = vector.load %arg9[%c0_23, %c0_24] : memref<8x128xf32, #tpu.memory_space<vmem>>, vector<8x128xf32>
    %48 = vector.shape_cast %34 : vector<8x128xf32> to vector<1x8x128xf32>
    %cst_25 = arith.constant dense<0.000000e+00> : vector<8x128xf32>
    %49 = vector.multi_reduction <add>, %48, %cst_25 [0] : vector<1x8x128xf32> to vector<8x128xf32>
    %50 = arith.addf %47, %49 : vector<8x128xf32>
    %c0_26 = arith.constant 0 : index
    %c0_27 = arith.constant 0 : index
    %51 = vector.load %arg9[%c0_26, %c0_27] : memref<8x128xf32, #tpu.memory_space<vmem>>, vector<8x128xf32>
    tpu.vector_store %arg9[%c0_26, %c0_27], %50 {strides = array<i32>} : memref<8x128xf32, #tpu.memory_space<vmem>>, vector<8x128xf32>,
    %c0_i32_28 = arith.constant 0 : i32
    %52 = arith.cmpi eq, %arg1, %c0_i32_28 : i32
    %53 = arith.extui %52 : i1 to i32
    %c0_i32_29 = arith.constant 0 : i32
    %54 = arith.cmpi ne, %53, %c0_i32_29 : i32
    scf.if %54 {
      %c0_30 = arith.constant 0 : index
      %c0_31 = arith.constant 0 : index
      %55 = vector.load %arg7[%c0_30, %c0_31] : memref<8x128xf32, #tpu.memory_space<vmem>>, vector<8x128xf32>
      %c0_32 = arith.constant 0 : index
      %c0_33 = arith.constant 0 : index
      %c0_34 = arith.constant 0 : index
      %56 = vector.load %arg4[%c0_32, %c0_33, %c0_34] : memref<1x8x128xf32, #tpu.memory_space<vmem>>, vector<1x8x128xf32>
      %57 = vector.shape_cast %56 : vector<1x8x128xf32> to vector<8x128xf32>
      %58 = vector.shape_cast %55 : vector<8x128xf32> to vector<1x8x128xf32>
      tpu.vector_store %arg4[%c0_32, %c0_33, %c0_34], %58 {strides = array<i32>} : memref<1x8x128xf32, #tpu.memory_space<vmem>>, vector<1x8x128xf32>,
      %c0_35 = arith.constant 0 : index
      %c0_36 = arith.constant 0 : index
      %59 = vector.load %arg8[%c0_35, %c0_36] : memref<8x128xf32, #tpu.memory_space<vmem>>, vector<8x128xf32>
      %c0_37 = arith.constant 0 : index
      %c0_38 = arith.constant 0 : index
      %c0_39 = arith.constant 0 : index
      %60 = vector.load %arg5[%c0_37, %c0_38, %c0_39] : memref<1x8x128xf32, #tpu.memory_space<vmem>>, vector<1x8x128xf32>
      %61 = vector.shape_cast %60 : vector<1x8x128xf32> to vector<8x128xf32>
      %62 = vector.shape_cast %59 : vector<8x128xf32> to vector<1x8x128xf32>
      tpu.vector_store %arg5[%c0_37, %c0_38, %c0_39], %62 {strides = array<i32>} : memref<1x8x128xf32, #tpu.memory_space<vmem>>, vector<1x8x128xf32>,
      %c0_40 = arith.constant 0 : index
      %c0_41 = arith.constant 0 : index
      %63 = vector.load %arg9[%c0_40, %c0_41] : memref<8x128xf32, #tpu.memory_space<vmem>>, vector<8x128xf32>
      %c0_42 = arith.constant 0 : index
      %c0_43 = arith.constant 0 : index
      %c0_44 = arith.constant 0 : index
      %64 = vector.load %arg6[%c0_42, %c0_43, %c0_44] : memref<1x8x128xf32, #tpu.memory_space<vmem>>, vector<1x8x128xf32>
      %65 = vector.shape_cast %64 : vector<1x8x128xf32> to vector<8x128xf32>
      %66 = vector.shape_cast %63 : vector<8x128xf32> to vector<1x8x128xf32>
      tpu.vector_store %arg6[%c0_42, %c0_43, %c0_44], %66 {strides = array<i32>} : memref<1x8x128xf32, #tpu.memory_space<vmem>>, vector<1x8x128xf32>,
    } else {
    }
    return
  }
  func.func @transform_0(%arg0: i32, %arg1: i32) -> (i32, i32) {
    %c1_i32 = arith.constant 1 : i32
    %0 = arith.muli %arg0, %c1_i32 : i32
    %1 = arith.addi %0, %arg1 : i32
    %c0_i32 = arith.constant 0 : i32
    %c0_i32_0 = arith.constant 0 : i32
    return %1, %c0_i32 : i32, i32
  }
  func.func @transform_1(%arg0: i32, %arg1: i32) -> (i32, i32) {
    %c1_i32 = arith.constant 1 : i32
    %0 = arith.muli %arg0, %c1_i32 : i32
    %1 = arith.addi %0, %arg1 : i32
    %c0_i32 = arith.constant 0 : i32
    %c0_i32_0 = arith.constant 0 : i32
    return %1, %c0_i32 : i32, i32
  }
  func.func @transform_2(%arg0: i32, %arg1: i32) -> (i32, i32, i32) {
    %c0_i32 = arith.constant 0 : i32
    %c0_i32_0 = arith.constant 0 : i32
    %c0_i32_1 = arith.constant 0 : i32
    return %arg0, %c0_i32, %c0_i32_0 : i32, i32, i32
  }
  func.func @transform_3(%arg0: i32, %arg1: i32) -> (i32, i32, i32) {
    %c0_i32 = arith.constant 0 : i32
    %c0_i32_0 = arith.constant 0 : i32
    %c0_i32_1 = arith.constant 0 : i32
    return %arg0, %c0_i32, %c0_i32_0 : i32, i32, i32
  }
  func.func @transform_4(%arg0: i32, %arg1: i32) -> (i32, i32, i32) {
    %c0_i32 = arith.constant 0 : i32
    %c0_i32_0 = arith.constant 0 : i32
    %c0_i32_1 = arith.constant 0 : i32
    return %arg0, %c0_i32, %c0_i32_0 : i32, i32, i32
  }
}

</mosaic_0001>

<bundles_post_ra>
// kernel: tpu_custom_call.1
= control target key start
LH: loop header
LB: loop body
LE: loop exit
PB: predicated region body
PF: predicated region fallthrough
CT: control target
= control target key end

     0   :  { %s1152_s0 = inlined_call_operand.hbm [shape: f32[16,128], index: 0, kind: input, shape index: {}]   ;;  %s1153_s1 = inlined_call_operand.hbm [shape: f32[16,128], index: 1, kind: input, shape index: {}]   ;;  %s1154_s2 = inlined_call_operand.hbm [shape: f32[2,8,128], index: 2, kind: output, shape index: {0}]   ;;  %s1155_s3 = inlined_call_operand.hbm [shape: f32[2,8,128], index: 3, kind: output, shape index: {1}]   ;;  %s1156_s4 = inlined_call_operand.hbm [shape: f32[2,8,128], index: 4, kind: output, shape index: {2}]  }
   0x1   :  { %1159 = sst [smem:[#allocation18_spill]] %s1152_s0 }
   0x2   :  { %10 = vsyncpa [#allocation6], 0 }
   0x3   :  { %12 = vsyncpa [#allocation6 + $0x1], 0 }
   0x4   :  { %13 = vsyncpa [#allocation9], 0 }
   0x5   :  { %15 = vsyncpa [#allocation9 + $0x1], 0 }
   0x6   :  { %16 = vsyncpa [#allocation7], 0 }
   0x7   :  { %18 = vsyncpa [#allocation7 + $0x1], 0 }
   0x8   :  { %19 = vsyncpa [#allocation12], 0 }
   0x9   :  { %21 = vsyncpa [#allocation12 + $0x1], 0  ;;  %s897_s15 = smov 0   ;;  %s899_s16 = smov 0  }
   0xa   :  { %s901_s17 = smov 0   ;;  %s903_s18 = smov 0  }
   0xb   :  { %s905_s19 = smov 0   ;;  %s907_s20 = smov 0  }
   0xc LB: > { %s928_s21 = sadd.s32 4294967295, %s865_s20   ;;  %s1157_s22 = sadd.s32 4294967294, %s865_s20   ;;  %s865_s20 = sphi %s907_s20, %s27_s20   ;;  %s861_s19 = sphi %s905_s19, %s1174_s19   ;;  %s857_s18 = sphi %s903_s18, %s1173_s18   ;;  %s853_s17 = sphi %s901_s17, %s1172_s17   ;;  %s849_s16 = sphi %s899_s16, %s1171_s16   ;;  %s845_s15 = sphi %s897_s15, %s1170_s15  }
   0xd   : > { %s39_s23 = sadd.s32 1, %s861_s19  ;;  %s48_s24 = sadd.s32 1, %s853_s17 }
   0xe   : > { %p41_p0 = scmp.ge.s32.totalorder %s39_s23, 2  ;;  %p55_p1 = scmp.ne.s32.totalorder %s853_s17, %s849_s16 }
   0xf   : > { %p56_p2 = scmp.eq.s32.totalorder %s865_s20, 0  ;;  %p61_p3 = scmp.ne.s32.totalorder %s849_s16, %s845_s15 }
  0x10   : > { %s1176_s23 = smov (%p41_p0, %s39_s23), 0  ;;  %p62_p5 = scmp.eq.s32.totalorder %s928_s21, 0 }
  0x11   : > { %p940_p4 = por %p56_p2, %p55_p1  ;;  %s45_s26 = ssub.s32 %s861_s19, %s1176_s23 }
  0x12   : > { %p113_p6 = scmp.eq.s32.totalorder %s928_s21, 1  ;;  %p46_p7 = scmp.eq.s32.totalorder %s45_s26, 0 }
  0x13   : > { %p948_p8 = por %p62_p5, %p61_p3  ;;  %p119_p10 = scmp.eq.s32.totalorder %s1157_s22, 1 }
  0x14   : > { %p952_p9 = por %p113_p6, %p55_p1  ;;  %p613_p13 = scmp.lt.s32.totalorder %s865_s20, 2 }
  0x15   : > { %s959_s29 = scalar_select %p46_p7, %s853_s17, %s48_s24  }
  0x16   : > { %p961_p11 = por %p119_p10, %p61_p3  ;;  %s968_s5 = sand.u32 1, %s853_s17  }
  0x17   : > { %s568_s6 = sshll.u32 %s968_s5, 3  ;;  %s569_s7 = sshll.u32 %s861_s19, 7 }
  0x18   : > { %s1164_s0 = sld [smem:[#allocation18_spill]]  ;;  %s195_s11 = scalar_lea.vmem [#allocation5], %s568_s6 }
  0x19   : > { %s203_s12 = sshll.u32 %s195_s11, 4  ;;  %p977_p0 = pnand %p613_p13, %p940_p4  ;;  %s204_s12 = int_to_ptr.vmem [resolvable:$true] %s203_s12 }
  0x1a   : > { %p572_p1 = scmp.ge.s32.totalorder %s865_s20, 1  ;;  %p227_p2 = scmp.lt.s32.totalorder %s865_s20, 3 }
  0x1b   : > { %s192_s14 = scalar_lea.sflag [#allocation6], %s968_s5  ;;  %p671_p3 = pneg %p977_p0 }
  0x1c   : > { %s682_s24 = scalar_lea.vmem %s204_s12, 128  ;;  %s867_s26 = smov [#allocation5]  }
  0x1d   : > { %p683_p5 = scmp.ne.s32.totalorder %s204_s12, %s682_s24  ;;  %s687_s8 = sshll.u32 %s867_s26, 4  ;;  %s688_s8 = int_to_ptr.vmem [resolvable:$false] %s687_s8 }
  0x1e   : > { %s201_s10 = scalar_lea.hbm %s1164_s0, %s569_s7  ;;  %s689_s25 = scalar_lea.vmem %s688_s8, 256 }
  0x1f   : > { %p685_p6 = pnand %p683_p5, %p671_p3  ;;  %p690_p4 = scmp.lt.s32.totalorder %s204_s12, %s688_s8 }
  0x20   : > { %p691_p10 = scmp.lt.s32.totalorder %s689_s25, %s682_s24 }
  0x21   : > { %p686_p7 = pneg %p685_p6 }
  0x22   : > { %p692_p13 = por %p691_p10, %p690_p4 }
  0x24   : > { %p693_p12 = pnand %p692_p13, %p686_p7 }
  0x26   : > { %696 = shalt.err (!%p693_p12)
}
  0x27   : > { %599 = dma.hbm_to_vmem [thread:$0]  (!%p977_p0), %s201_s10, 128, %s204_s12, %s192_s14  }
  0x28   : > { %p995_p5 = pnand %p572_p1, %p227_p2  ;;  %s220_s24 = scalar_lea.hbm %s1153_s1, %s569_s7 }
  0x29   : > { %s214_s8 = scalar_lea.vmem [#allocation8], %s568_s6  ;;  %s211_s22 = scalar_lea.sflag [#allocation9], %s968_s5 }
  0x2a   : > { %s222_s25 = sshll.u32 %s214_s8, 4  ;;  %s868_s10 = smov [#allocation8]   ;;  %s223_s25 = int_to_ptr.vmem [resolvable:$true] %s222_s25 }
  0x2b   : > { %s710_s0 = scalar_lea.vmem %s223_s25, 128  ;;  %s715_s12 = sshll.u32 %s868_s10, 4  ;;  %s716_s12 = int_to_ptr.vmem [resolvable:$false] %s715_s12 }
  0x2c   : > { %p711_p12 = scmp.ne.s32.totalorder %s223_s25, %s710_s0  ;;  %s717_s14 = scalar_lea.vmem %s716_s12, 256 }
  0x2d   : > { %p718_p1 = scmp.lt.s32.totalorder %s223_s25, %s716_s12  ;;  %p719_p2 = scmp.lt.s32.totalorder %s717_s14, %s710_s0 }
  0x2e   : > { %p713_p6 = pnand %p711_p12, %p671_p3 }
  0x2f   : > { %p720_p4 = por %p719_p2, %p718_p1 }
  0x30   : > { %p714_p7 = pneg %p713_p6 }
  0x32   : > { %p721_p10 = pnand %p720_p4, %p714_p7 }
  0x34   : > { %724 = shalt.err (!%p721_p10)
}
  0x35   : > { %602 = dma.hbm_to_vmem [thread:$0]  (!%p977_p0), %s220_s24, 128, %s223_s25, %s211_s22  }
  0x36   : > { %231 = sbr.rel (%p995_p5) target bundleno = 162 (0xa2), region = 28  ;;  %s1011_s5 = sand.u32 (!%p995_p5), 1, %s849_s16  }
  0x37   : > { %s1014_s6 = sshll.u32 (!%p995_p5), %s1011_s5, 3  ;;  %s234_s7 = scalar_lea.sflag (!%p995_p5), [#allocation6], %s1011_s5 }
  0x38   : > { %s237_s0 = scalar_lea.vmem (!%p995_p5), [#allocation5], %s1014_s6 }
  0x3b   : > { %828 = dma.done.wait (%p948_p8), %s234_s7, 128  }
  0x3c   : > { %830 = vsyncadd (%p948_p8), %s234_s7, 4294967168  ;;  %s243_s22 = scalar_lea.sflag [#allocation9], %s1011_s5  ;;  %s246_s13 = scalar_lea.vmem [#allocation8], %s1014_s6 }
  0x3d   : > { %832 = dma.done.wait (%p948_p8), %s243_s22, 128  }
  0x3e   : > { %834 = vsyncadd (%p948_p8), %s243_s22, 4294967168  ;;  %v295_v0 = vld [vmem:[%s237_s0] sm:$0xff]  ;;  %s278_s27 = scalar_lea.vmem [#allocation11], %s1014_s6  ;;  %s271_s11 = scalar_lea.vmem [#allocation10], %s1014_s6  ;;  %v1036_v16 = vld [vmem:[%s246_s13] sm:$0xff] }
  0x3f   : > { %v297_v1 = vand.u32 2147483647, %v295_v0  ;;  %v316_v9 = vsub.f32 0.0, %v295_v0  ;;  %s387_s9 = sshll.u32 %s278_s27, 4  ;;  %vm313_vm0 = vcmp.ge.f32.partialorder %v295_v0, 0.0  ;;  %s374_s26 = sshll.u32 %s271_s11, 4  ;;  %s1038_s9 = int_to_ptr.vmem [resolvable:$true] %s387_s9  ;;  %s1040_s26 = int_to_ptr.vmem [resolvable:$true] %s374_s26 }
  0x40   : > { %v320_v15 = vmax.f32 %v295_v0, 0.0  ;;  %s355_s24 = sand.u32 1, %s928_s21   ;;  %s1032_s8 = sshll.u32 %s857_s18, 7  ;;  %v324_v24 = vsub.f32 1.0, %v1036_v16 }
  0x41   : > { %v298_v2 = vsub.f32 0.0, %v297_v1  ;;  %v317_v14 = vmax.f32 %v316_v9, 0.0  ;;  %s1048_s25 = scalar_lea.hbm %s1155_s3, %s1032_s8  ;;  %s1055_s14 = scalar_lea.hbm %s1154_s2, %s1032_s8 }
  0x42   : > { %s1158_s7 = scalar_lea.vmem [#allocation13], %s1014_s6  ;;  %s1062_s22 = scalar_lea.sflag [#allocation12], %s355_s24 }
  0x43   : > { %v299_v3 = vmul.f32 1.442695, %v298_v2  ;;  %s1060_s0 = sshll.u32 %s1158_s7, 4  ;;  %s725_s13 = scalar_lea.vmem %s1038_s9, 128  ;;  %s401_s0 = int_to_ptr.vmem [resolvable:$true] %s1060_s0 }
  0x44   : > { %p726_p8 = scmp.ne.s32.totalorder %s1038_s9, %s725_s13  ;;  %s869_s18 = smov [#allocation11]  }
  0x45   : > { %663 = vpow2.f32 %v299_v3  ;;  %s729_s21 = sshll.u32 %s869_s18, 4  ;;  %s730_s21 = int_to_ptr.vmem [resolvable:$false] %s729_s21 }
  0x46   : > { %p727_p0 = pnand %p726_p8, %p952_p9  ;;  %s731_s10 = scalar_lea.vmem %s730_s21, 256 }
  0x47   : > { %p732_p13 = scmp.lt.s32.totalorder %s1038_s9, %s730_s21  ;;  %p733_p5 = scmp.lt.s32.totalorder %s731_s10, %s725_s13 }
  0x48   : > { %p728_p3 = pneg %p727_p0 }
  0x49   : > { %p734_p12 = por %p733_p5, %p732_p13 }
  0x4b   : > { %p735_p6 = pnand %p734_p12, %p728_p3 }
  0x52   : > { %v664_v4 = vpop.eup %663 }
  0x53   : > { %v301_v5 = vadd.f32 1.0, %v664_v4  ;;  %v304_v6 = vmul.f32 -0.5, %v664_v4  ;;  %v307_v8 = vand.u32 2147483647, %v664_v4 }
  0x55   : > { %665 = vrcp.f32 %v301_v5  ;;  %v305_v7 = vadd.f32 1.0, %v304_v6  ;;  %vm308_vm1 = vcmp.lt.f32.partialorder %v307_v8, 0.0004427343 }
  0x56   : > { %667 = vlog2.f32 %v301_v5 }
  0x57   : > { %v306_v11 = vmul.f32 %v664_v4, %v305_v7 }
  0x62   : > { %v666_v10 = vpop.eup %665 }
  0x63   : > { %v668_v12 = vpop.eup %667  ;;  %v314_v13 = vmul.f32 %v666_v10, %v664_v4 }
  0x64   : > { %v303_v17 = vmul.f32 0.6931472, %v668_v12 }
  0x65   : > { %v315_v18 = vsel %vm313_vm0, %v666_v10, %v314_v13 }
  0x66   : > { %v333_v19 = vmul.f32 %v315_v18, %v1036_v16  ;;  %v328_v20 = vadd.f32 %v315_v18, %v1036_v16  ;;  %v309_v21 = vsel %vm308_vm1, %v306_v11, %v303_v17 }
  0x67   : > { %v318_v22 = vadd.f32 %v317_v14, %v309_v21  ;;  %v321_v23 = vadd.f32 %v320_v15, %v309_v21 }
  0x68   : > { %347 = vst [vmem:[%s278_s27] sm:$0xff] %v333_v19  ;;  %345 = vst [vmem:[%s271_s11] sm:$0xff] %v328_v20 }
  0x69   : > { %v319_v25 = vmin.f32 %v318_v22, 100.0  ;;  %v322_v26 = vmin.f32 %v321_v23, 100.0 }
  0x6a   : > { %738 = shalt.err (!%p735_p6)
}
  0x6b   : > { %s739_s27 = scalar_lea.hbm %s1048_s25, 128  ;;  %s743_s12 = scalar_lea.hbm %s1155_s3, 256 }
  0x6c   : > { %p740_p7 = scmp.ne.s32.totalorder %s1048_s25, %s739_s27  ;;  %p744_p4 = scmp.lt.s32.totalorder %s1048_s25, %s1155_s3 }
  0x6d   : > { %p745_p10 = scmp.lt.s32.totalorder %s743_s12, %s739_s27 }
  0x6e   : > { %p741_p1 = pnand %p740_p7, %p952_p9 }
  0x6f   : > { %p746_p8 = por %p745_p10, %p744_p4 }
  0x70   : > { %p742_p2 = pneg %p741_p1 }
  0x72   : > { %p747_p0 = pnand %p746_p8, %p742_p2 }
  0x74   : > { %750 = shalt.err (!%p747_p0)
}
  0x75   : > { %591 = dma.vmem_to_hbm [thread:$0]  (%p952_p9), %s1038_s9, 128, %s1048_s25, %s1062_s22  }
  0x76   : > { %s351_s13 = scalar_lea.sflag [#allocation7], %s1011_s5  ;;  %s751_s21 = scalar_lea.vmem %s1040_s26, 128 }
  0x77   : > { %p752_p3 = scmp.ne.s32.totalorder %s1040_s26, %s751_s21  ;;  %s870_s7 = smov [#allocation10]  }
  0x78   : > { %s755_s10 = sshll.u32 %s870_s7, 4  ;;  %s756_s10 = int_to_ptr.vmem [resolvable:$false] %s755_s10 }
  0x79   : > { %p753_p13 = pnand %p752_p3, %p952_p9  ;;  %s757_s27 = scalar_lea.vmem %s756_s10, 256 }
  0x7a   : > { %p758_p12 = scmp.lt.s32.totalorder %s1040_s26, %s756_s10  ;;  %p759_p6 = scmp.lt.s32.totalorder %s757_s27, %s751_s21 }
  0x7b   : > { %p754_p5 = pneg %p753_p13 }
  0x7c   : > { %p760_p7 = por %p759_p6, %p758_p12 }
  0x7e   : > { %p761_p1 = pnand %p760_p7, %p754_p5 }
  0x80   : > { %764 = shalt.err (!%p761_p1)
}
  0x81   : > { %s765_s9 = scalar_lea.hbm %s1055_s14, 128  ;;  %s769_s11 = scalar_lea.hbm %s1154_s2, 256 }
  0x82   : > { %p766_p2 = scmp.ne.s32.totalorder %s1055_s14, %s765_s9  ;;  %p770_p8 = scmp.lt.s32.totalorder %s1055_s14, %s1154_s2 }
  0x83   : > { %p771_p0 = scmp.lt.s32.totalorder %s769_s11, %s765_s9 }
  0x84   : > { %p767_p4 = pnand %p766_p2, %p952_p9 }
  0x85   : > { %p772_p3 = por %p771_p0, %p770_p8 }
  0x86   : > { %p768_p10 = pneg %p767_p4 }
  0x88   : > { %p773_p13 = pnand %p772_p3, %p768_p10 }
  0x8a   : > { %776 = shalt.err (!%p773_p13)
}
  0x8b   : > { %590 = dma.vmem_to_hbm [thread:$0]  (%p952_p9), %s1040_s26, 128, %s1055_s14, %s351_s13   ;;  %v323_v27 = vmul.f32 %v319_v25, %v1036_v16  ;;  %v325_v28 = vmul.f32 %v324_v24, %v322_v26 }
  0x8c   : > { %s398_s7 = scalar_lea.hbm %s1156_s4, %s1032_s8  ;;  %s1167_s10 = scalar_lea.vmem [#allocation13], %s1014_s6 }
  0x8d   : > { %v326_v29 = vadd.f32 %v325_v28, %v323_v27  ;;  %s777_s27 = scalar_lea.vmem %s401_s0, 128  ;;  %s871_s9 = smov [#allocation13]  }
  0x8e   : > { %p778_p5 = scmp.ne.s32.totalorder %s401_s0, %s777_s27  ;;  %s781_s5 = sshll.u32 %s871_s9, 4  ;;  %s782_s5 = int_to_ptr.vmem [resolvable:$false] %s781_s5 }
  0x8f   : > { %349 = vst [vmem:[%s1167_s10] sm:$0xff] %v326_v29  ;;  %s783_s26 = scalar_lea.vmem %s782_s5, 256  ;;  %p784_p7 = scmp.lt.s32.totalorder %s401_s0, %s782_s5 }
  0x90   : > { %p779_p12 = pnand %p778_p5, %p952_p9  ;;  %p785_p1 = scmp.lt.s32.totalorder %s783_s26, %s777_s27 }
  0x92   : > { %p780_p6 = pneg %p779_p12  ;;  %p786_p2 = por %p785_p1, %p784_p7 }
  0x94   : > { %p787_p4 = pnand %p786_p2, %p780_p6 }
  0x96   : > { %790 = shalt.err (!%p787_p4)
}
  0x97   : > { %s791_s14 = scalar_lea.hbm %s398_s7, 128  ;;  %s795_s13 = scalar_lea.hbm %s1156_s4, 256 }
  0x98   : > { %p792_p10 = scmp.ne.s32.totalorder %s398_s7, %s791_s14  ;;  %p796_p3 = scmp.lt.s32.totalorder %s398_s7, %s1156_s4 }
  0x99   : > { %p797_p13 = scmp.lt.s32.totalorder %s795_s13, %s791_s14 }
  0x9a   : > { %p793_p8 = pnand %p792_p10, %p952_p9 }
  0x9b   : > { %p798_p5 = por %p797_p13, %p796_p3 }
  0x9c   : > { %p794_p0 = pneg %p793_p8 }
  0x9e   : > { %p799_p12 = pnand %p798_p5, %p794_p0 }
  0xa0   : > { %802 = shalt.err (!%p799_p12)
}
  0xa1   : > { %592 = dma.vmem_to_hbm [thread:$0]  (%p952_p9), %s401_s0, 128, %s398_s7, %s1062_s22  }
  0xa2 PF: > { %s412_s24 = sand.u32 1, %s845_s15   ;;  %p1168_p6 = scmp.ge.s32.totalorder %s865_s20, 2 }
  0xa3   : > { %s413_s12 = scalar_lea.sflag [#allocation7], %s412_s24 }
  0xa4   : > { %p604_p7 = pnand %p1168_p6, %p961_p11 }
  0xa6   : > { %p605_p1 = pneg %p604_p7 }
  0xa8   : > { %836 = dma.done.wait (%p605_p1), %s413_s12, 128  }
  0xa9   : > { %838 = vsyncadd (%p605_p1), %s413_s12, 4294967168  ;;  %s1169_s18 = sadd.s32 4294967294, %s865_s20  }
  0xaa   : > { %s421_s21 = sand.u32 1, %s1169_s18  }
  0xab   : > { %s422_s10 = scalar_lea.sflag [#allocation12], %s421_s21 }
  0xac   : > { %840 = dma.done.wait (%p605_p1), %s422_s10, 256  }
  0xad   : > { %842 = vsyncadd (%p605_p1), %s422_s10, 4294967040  ;;  %s27_s20 = sadd.s32 1, %s865_s20   ;;  %s1170_s15 = smov %s849_s16 }
  0xae   : > { %p24_p9 = scmp.ge.s32.totalorder %s27_s20, 4   ;;  %s1171_s16 = smov %s853_s17 }
  0xaf   : > { %s1172_s17 = smov %s959_s29  ;;  %s1173_s18 = smov %s861_s19 }
  0xb0   : > { %s1174_s19 = smov %s1176_s23  ;;  %26 = sbr.rel (!%p24_p9) target bundleno = 12 (0xc), region = 126 }
  0xb5   :  { %436 = vsyncpa [#allocation6], 1 }
  0xb6   :  { %438 = vsyncpa [#allocation6 + $0x1], 1 }
  0xb7   :  { %439 = vsyncpa [#allocation9], 1 }
  0xb8   :  { %441 = vsyncpa [#allocation9 + $0x1], 1 }
  0xb9   :  { %442 = vsyncpa [#allocation7], 1 }
  0xba   :  { %444 = vsyncpa [#allocation7 + $0x1], 1 }
  0xbb   :  { %445 = vsyncpa [#allocation12], 1 }
  0xbc   :  { %447 = vsyncpa [#allocation12 + $0x1], 1 }

</bundles_post_ra>
